<compile_context>
chip_gen: v5e
topology: v5e:2x2
jax: 0.10.0
libtpu: 0.0.40
codegen_flags: <defaults>
</compile_context>

<pallas_src>
import jax
import jax.numpy as jnp
from jax.experimental import pallas as pl
from jax.experimental.pallas import tpu as pltpu


def _round_up(x, m):
    return ((x + m - 1) // m) * m


def _encoder_kernel(a_ref, x_ref, w_ref, b_ref, o_ref, act0_ref, act1_ref, h_ref):
    """One grid step = (layer l, row tile i).

    a_ref  : (tm, N_pad)       bf16  row tile of A_hat
    x_ref  : (N_pad, C_pad)    f32   padded input features (resident; constant index map)
    w_ref  : (1, C_pad, C_pad) f32   this layer's zero-padded weight
    b_ref  : (1, 1, C_pad)     f32   this layer's zero-padded bias
    o_ref  : (tm, C_pad)       f32   lane-dense output row tile (last layer's pass survives)
    act0/1 : (N_pad, C_pad)    f32   ping-pong activation buffers (VMEM resident)
    h_ref  : (N_pad, C_pad)    bf16  per-layer transformed features H = X_l @ W_l
    """
    l = pl.program_id(0)          # layer index (sequential)
    i = pl.program_id(1)          # row-tile index
    tm = a_ref.shape[0]
    row0 = pl.multiple_of(i * tm, tm)

    def _compute_h(src):
        # Feature transform, computed ONCE per layer.  Cast to bf16 so both operands of
        # the dominant aggregation matmul are bf16 (native MXU), accumulation stays f32.
        h_ref[...] = jnp.dot(
            src, w_ref[0], preferred_element_type=jnp.float32
        ).astype(h_ref.dtype)

    @pl.when(i == 0)
    def _():
        @pl.when(l == 0)
        def _():
            _compute_h(x_ref[...])

        # layer l-1 wrote act1 when (l-1) is even  <=>  l is odd
        @pl.when(jnp.logical_and(l > 0, l % 2 == 1))
        def _():
            _compute_h(act1_ref[...])

        @pl.when(jnp.logical_and(l > 0, l % 2 == 0))
        def _():
            _compute_h(act0_ref[...])

    # Aggregation for this row tile: A_hat[rows, :] @ H  (bf16 MXU, f32 accumulate).
    agg = jnp.dot(a_ref[...], h_ref[...], preferred_element_type=jnp.float32)
    # Bias + ReLU fused on the VPU, in f32, applied once per output tile.
    out_tile = jnp.maximum(agg + b_ref[0], 0.0)

    # Ping-pong store of the activation for the next layer (stays in VMEM, no HBM trip).
    @pl.when(l % 2 == 0)
    def _():
        act1_ref[pl.ds(row0, tm), :] = out_tile

    @pl.when(l % 2 == 1)
    def _():
        act0_ref[pl.ds(row0, tm), :] = out_tile

    # Lane-dense (C_pad = multiple of 128) output store; the last layer overwrites.
    o_ref[...] = out_tile.astype(o_ref.dtype)


def encoder_forward(a_hat_bf16, x_pad, w_stack, b_stack, *, tm):
    """Fused k-layer GCN encoder.  a_hat_bf16: (N_pad, N_pad) bf16; x_pad: (N_pad, C_pad) f32;
    w_stack: (k, C_pad, C_pad) f32; b_stack: (k, 1, C_pad) f32."""
    k, c_pad, _ = w_stack.shape
    n_pad = x_pad.shape[0]
    n_tiles = n_pad // tm

    grid_spec = pltpu.PrefetchScalarGridSpec(
        num_scalar_prefetch=0,
        grid=(k, n_tiles),  # layer axis outer (sequential), aggregation row tiles inner
        in_specs=[
            pl.BlockSpec((tm, n_pad), lambda l, i: (i, 0)),           # A_hat row tile
            pl.BlockSpec((n_pad, c_pad), lambda l, i: (0, 0)),        # X (resident)
            pl.BlockSpec((1, c_pad, c_pad), lambda l, i: (l, 0, 0)),  # W_l (resident per layer)
            pl.BlockSpec((1, 1, c_pad), lambda l, i: (l, 0, 0)),      # b_l
        ],
        out_specs=pl.BlockSpec((tm, c_pad), lambda l, i: (i, 0)),
        scratch_shapes=[
            pltpu.VMEM((n_pad, c_pad), jnp.float32),    # act0 (ping)
            pltpu.VMEM((n_pad, c_pad), jnp.float32),    # act1 (pong)
            pltpu.VMEM((n_pad, c_pad), jnp.bfloat16),   # H = X_l @ W_l
        ],
    )
    return pl.pallas_call(
        _encoder_kernel,
        out_shape=jax.ShapeDtypeStruct((n_pad, c_pad), jnp.float32),
        grid_spec=grid_spec,
        # Both axes must be sequential: row tiles of layer l+1 read VMEM activations written
        # by *all* row tiles of layer l.
        # TODO(synk): on v7x the row-tile axis could be split across the 2 TensorCores only
        # with an explicit cross-core barrier between layers; kept "arbitrary" for correctness.
        compiler_params=pltpu.CompilerParams(
            dimension_semantics=("arbitrary", "arbitrary"),
        ),
    )(a_hat_bf16, x_pad, w_stack, b_stack)


def normalized_adjacency(edge_index, num_nodes):
    """Dense D^-1/2 (A + I) D^-1/2 from a [2, E] edge_index (PyG convention:
    row 0 = source, row 1 = target; messages flow source -> target).  Setup glue, not hot path.
    Note: duplicate edges / pre-existing self-loops are clamped to 1 (same as the previous
    version); PyG's scatter-add would count them, so degrees can differ on multigraphs."""
    src, dst = edge_index[0], edge_index[1]
    a = jnp.zeros((num_nodes, num_nodes), jnp.float32)
    a = a.at[dst, src].set(1.0)                                  # row i sums over in-neighbors j
    a = jnp.maximum(a, jnp.eye(num_nodes, dtype=jnp.float32))    # add self-loops
    deg = a.sum(axis=1)
    dinv = jnp.where(deg > 0, 1.0 / jnp.sqrt(deg), 0.0)
    return dinv[:, None] * a * dinv[None, :]


class EncoderPallas:
    """Mirror of Encoder(in_channels, out_channels, activation=ReLU, base_model=GCNConv, k)."""

    def __init__(self, in_channels, out_channels, k=2, key=jax.random.PRNGKey(0)):
        assert k >= 1
        self.k = k
        self.in_channels = in_channels
        self.out_channels = out_channels
        if k == 1:
            dims = [(in_channels, out_channels)]
        else:
            dims = [(in_channels, 2 * out_channels)]
            for _ in range(1, k - 1):
                dims.append((2 * out_channels, 2 * out_channels))
            dims.append((2 * out_channels, out_channels))
        self.dims = dims

        # Lane-dense padded channel width shared by all layers (multiple of 128).
        self.c_pad = _round_up(max(max(fi, fo) for fi, fo in dims), 128)

        self.params = []
        for fi, fo in dims:
            key, kw = jax.random.split(key)
            scale = 1.0 / jnp.sqrt(jnp.float32(fi))
            w = jax.random.uniform(kw, (fi, fo), jnp.float32, -scale, scale)
            b = jnp.zeros((1, fo), jnp.float32)  # GCNConv bias, kept 2D for TPU layout
            self.params.append((w, b))

        # Zero-padded, stacked weights/biases so one fused kernel covers all layers.
        # Zero-padded W columns + zero bias keep padded channels exactly 0 through every layer.
        w_stack = jnp.zeros((k, self.c_pad, self.c_pad), jnp.float32)
        b_stack = jnp.zeros((k, 1, self.c_pad), jnp.float32)
        for li, ((w, b), (fi, fo)) in enumerate(zip(self.params, dims)):
            w_stack = w_stack.at[li, :fi, :fo].set(w)
            b_stack = b_stack.at[li, :, :fo].set(b)
        self.w_stack = w_stack
        self.b_stack = b_stack

    def __call__(self, x, edge_index):
        n = x.shape[0]
        # Row tiling: keep full A_hat VMEM-resident across all layers for small graphs
        # (<= 2048 rows: bf16 A_hat <= 8 MiB), stream 512-row tiles otherwise.
        if n <= 2048:
            n_pad = _round_up(n, 8)
            tm = n_pad
        else:
            n_pad = _round_up(n, 512)
            tm = 512

        a_hat = normalized_adjacency(edge_index, n)
        a_pad = jnp.zeros((n_pad, n_pad), jnp.float32).at[:n, :n].set(a_hat)
        a_bf16 = a_pad.astype(jnp.bfloat16)   # halve HBM traffic of the dominant operand
        x_pad = jnp.zeros((n_pad, self.c_pad), jnp.float32).at[:n, : x.shape[1]].set(x)

        out_pad = encoder_forward(a_bf16, x_pad, self.w_stack, self.b_stack, tm=tm)
        return out_pad[:n, : self.out_channels]


if __name__ == "__main__":
    key = jax.random.PRNGKey(0)
    k_x, k_e, k_p = jax.random.split(key, 3)

    num_nodes = 16
    in_channels = 8
    out_channels = 16   # hidden dim inside the encoder is 2 * out_channels = 32
    num_edges = 32

    x = jax.random.normal(k_x, (num_nodes, in_channels), jnp.float32)
    edge_index = jax.random.randint(k_e, (2, num_edges), 0, num_nodes, jnp.int32)

    enc = EncoderPallas(in_channels, out_channels, k=2, key=k_p)
    out = enc(x, edge_index)
    jax.block_until_ready(out)

    # Pure-JAX reference using the same bf16 adjacency (f32 everything else).
    a_ref = normalized_adjacency(edge_index, num_nodes).astype(jnp.bfloat16).astype(jnp.float32)
    h = x
    for w, b in enc.params:
        h = jnp.maximum(a_ref @ (h @ w) + b, 0.0)

    assert out.shape == (num_nodes, out_channels)
    assert bool(jnp.all(out >= 0.0))                       # ReLU output
    assert bool(jnp.allclose(out, h, rtol=2e-2, atol=2e-2))
    print("KERNEL_OK")
</pallas_src>

<mosaic_0001>
module attributes {stable_mosaic.version = 11 : i64} {
  func.func @_encoder_kernel(%arg0: i32, %arg1: i32, %arg2: memref<16x16xbf16, #tpu.memory_space<vmem>>, %arg3: memref<16x128xf32, #tpu.memory_space<vmem>>, %arg4: memref<1x128x128xf32, #tpu.memory_space<vmem>>, %arg5: memref<1x1x128xf32, #tpu.memory_space<vmem>>, %arg6: memref<16x128xf32, #tpu.memory_space<vmem>>, %arg7: memref<16x128xf32, #tpu.memory_space<vmem>>, %arg8: memref<16x128xf32, #tpu.memory_space<vmem>>, %arg9: memref<16x128xbf16, #tpu.memory_space<vmem>>) attributes {dimension_semantics = [#tpu.dimension_semantics<arbitrary>, #tpu.dimension_semantics<arbitrary>], iteration_bounds = array<i64: 2, 1>, scalar_prefetch = 0 : i64, scratch_operands = 3 : i64, tpu.core_type = #tpu.core_type<tc>, window_params = [{transform_indices = @transform_0, window_bounds = array<i64: 16, 16>}, {pipeline_mode = #tpu.pipeline_mode<synchronous>, transform_indices = @transform_1, window_bounds = array<i64: 16, 128>}, {transform_indices = @transform_2, window_bounds = array<i64: 1, 128, 128>}, {transform_indices = @transform_3, window_bounds = array<i64: 1, 1, 128>}, {transform_indices = @transform_4, window_bounds = array<i64: 16, 128>}]} {
    %c16_i32 = arith.constant 16 : i32
    %0 = arith.muli %arg1, %c16_i32 : i32
    %1 = tpu.assume_multiple %0, 16 : i32
    %c0_i32 = arith.constant 0 : i32
    %2 = arith.cmpi eq, %arg1, %c0_i32 : i32
    %3 = arith.extui %2 : i1 to i32
    %c0_i32_0 = arith.constant 0 : i32
    %4 = arith.cmpi ne, %3, %c0_i32_0 : i32
    scf.if %4 {
      %c0_i32_24 = arith.constant 0 : i32
      %41 = arith.cmpi eq, %arg0, %c0_i32_24 : i32
      %42 = arith.extui %41 : i1 to i32
      %c0_i32_25 = arith.constant 0 : i32
      %43 = arith.cmpi ne, %42, %c0_i32_25 : i32
      scf.if %43 {
        %c0_44 = arith.constant 0 : index
        %c0_45 = arith.constant 0 : index
        %74 = vector.load %arg3[%c0_44, %c0_45] : memref<16x128xf32, #tpu.memory_space<vmem>>, vector<16x128xf32>
        %c0_46 = arith.constant 0 : index
        %c0_47 = arith.constant 0 : index
        %c0_48 = arith.constant 0 : index
        %75 = vector.load %arg4[%c0_46, %c0_47, %c0_48] : memref<1x128x128xf32, #tpu.memory_space<vmem>>, vector<1x128x128xf32>
        %76 = vector.shape_cast %75 : vector<1x128x128xf32> to vector<128x128xf32>
        %cst_49 = arith.constant dense<0.000000e+00> : vector<16x128xf32>
        %77 = tpu.matmul %74, %76, %cst_49 {dimension_numbers = #tpu.dot_dimension_numbers<[1], [0], [0], [1], [0, 0, 1, 1], [], []>} : vector<16x128xf32>, vector<128x128xf32>, vector<16x128xf32> -> vector<16x128xf32>
        %78 = arith.truncf %77 : vector<16x128xf32> to vector<16x128xbf16>
        %c0_50 = arith.constant 0 : index
        %c0_51 = arith.constant 0 : index
        %79 = vector.load %arg9[%c0_50, %c0_51] : memref<16x128xbf16, #tpu.memory_space<vmem>>, vector<16x128xbf16>
        tpu.vector_store %arg9[%c0_50, %c0_51], %78 {strides = array<i32>} : memref<16x128xbf16, #tpu.memory_space<vmem>>, vector<16x128xbf16>,
      } else {
      }
      %c0_i32_26 = arith.constant 0 : i32
      %44 = arith.cmpi sgt, %arg0, %c0_i32_26 : i32
      %c2_i32_27 = arith.constant 2 : i32
      %c0_i32_28 = arith.constant 0 : i32
      %45 = arith.cmpi eq, %c2_i32_27, %c0_i32_28 : i32
      %c1_i32_29 = arith.constant 1 : i32
      %46 = arith.select %45, %c1_i32_29, %c2_i32_27 : i32
      %47 = arith.remsi %arg0, %46 : i32
      %c0_i32_30 = arith.constant 0 : i32
      %48 = arith.cmpi ne, %47, %c0_i32_30 : i32
      %c0_i32_31 = arith.constant 0 : i32
      %49 = arith.cmpi slt, %47, %c0_i32_31 : i32
      %c0_i32_32 = arith.constant 0 : i32
      %50 = arith.cmpi slt, %46, %c0_i32_32 : i32
      %51 = arith.xori %49, %50 : i1
      %52 = arith.andi %51, %48 : i1
      %53 = arith.addi %47, %46 : i32
      %54 = arith.select %52, %53, %47 : i32
      %c1_i32_33 = arith.constant 1 : i32
      %55 = arith.cmpi eq, %54, %c1_i32_33 : i32
      %56 = arith.andi %44, %55 : i1
      %57 = arith.extui %56 : i1 to i32
      %c0_i32_34 = arith.constant 0 : i32
      %58 = arith.cmpi ne, %57, %c0_i32_34 : i32
      scf.if %58 {
        %c0_44 = arith.constant 0 : index
        %c0_45 = arith.constant 0 : index
        %74 = vector.load %arg8[%c0_44, %c0_45] : memref<16x128xf32, #tpu.memory_space<vmem>>, vector<16x128xf32>
        %c0_46 = arith.constant 0 : index
        %c0_47 = arith.constant 0 : index
        %c0_48 = arith.constant 0 : index
        %75 = vector.load %arg4[%c0_46, %c0_47, %c0_48] : memref<1x128x128xf32, #tpu.memory_space<vmem>>, vector<1x128x128xf32>
        %76 = vector.shape_cast %75 : vector<1x128x128xf32> to vector<128x128xf32>
        %cst_49 = arith.constant dense<0.000000e+00> : vector<16x128xf32>
        %77 = tpu.matmul %74, %76, %cst_49 {dimension_numbers = #tpu.dot_dimension_numbers<[1], [0], [0], [1], [0, 0, 1, 1], [], []>} : vector<16x128xf32>, vector<128x128xf32>, vector<16x128xf32> -> vector<16x128xf32>
        %78 = arith.truncf %77 : vector<16x128xf32> to vector<16x128xbf16>
        %c0_50 = arith.constant 0 : index
        %c0_51 = arith.constant 0 : index
        %79 = vector.load %arg9[%c0_50, %c0_51] : memref<16x128xbf16, #tpu.memory_space<vmem>>, vector<16x128xbf16>
        tpu.vector_store %arg9[%c0_50, %c0_51], %78 {strides = array<i32>} : memref<16x128xbf16, #tpu.memory_space<vmem>>, vector<16x128xbf16>,
      } else {
      }
      %c0_i32_35 = arith.constant 0 : i32
      %59 = arith.cmpi sgt, %arg0, %c0_i32_35 : i32
      %c2_i32_36 = arith.constant 2 : i32
      %c0_i32_37 = arith.constant 0 : i32
      %60 = arith.cmpi eq, %c2_i32_36, %c0_i32_37 : i32
      %c1_i32_38 = arith.constant 1 : i32
      %61 = arith.select %60, %c1_i32_38, %c2_i32_36 : i32
      %62 = arith.remsi %arg0, %61 : i32
      %c0_i32_39 = arith.constant 0 : i32
      %63 = arith.cmpi ne, %62, %c0_i32_39 : i32
      %c0_i32_40 = arith.constant 0 : i32
      %64 = arith.cmpi slt, %62, %c0_i32_40 : i32
      %c0_i32_41 = arith.constant 0 : i32
      %65 = arith.cmpi slt, %61, %c0_i32_41 : i32
      %66 = arith.xori %64, %65 : i1
      %67 = arith.andi %66, %63 : i1
      %68 = arith.addi %62, %61 : i32
      %69 = arith.select %67, %68, %62 : i32
      %c0_i32_42 = arith.constant 0 : i32
      %70 = arith.cmpi eq, %69, %c0_i32_42 : i32
      %71 = arith.andi %59, %70 : i1
      %72 = arith.extui %71 : i1 to i32
      %c0_i32_43 = arith.constant 0 : i32
      %73 = arith.cmpi ne, %72, %c0_i32_43 : i32
      scf.if %73 {
        %c0_44 = arith.constant 0 : index
        %c0_45 = arith.constant 0 : index
        %74 = vector.load %arg7[%c0_44, %c0_45] : memref<16x128xf32, #tpu.memory_space<vmem>>, vector<16x128xf32>
        %c0_46 = arith.constant 0 : index
        %c0_47 = arith.constant 0 : index
        %c0_48 = arith.constant 0 : index
        %75 = vector.load %arg4[%c0_46, %c0_47, %c0_48] : memref<1x128x128xf32, #tpu.memory_space<vmem>>, vector<1x128x128xf32>
        %76 = vector.shape_cast %75 : vector<1x128x128xf32> to vector<128x128xf32>
        %cst_49 = arith.constant dense<0.000000e+00> : vector<16x128xf32>
        %77 = tpu.matmul %74, %76, %cst_49 {dimension_numbers = #tpu.dot_dimension_numbers<[1], [0], [0], [1], [0, 0, 1, 1], [], []>} : vector<16x128xf32>, vector<128x128xf32>, vector<16x128xf32> -> vector<16x128xf32>
        %78 = arith.truncf %77 : vector<16x128xf32> to vector<16x128xbf16>
        %c0_50 = arith.constant 0 : index
        %c0_51 = arith.constant 0 : index
        %79 = vector.load %arg9[%c0_50, %c0_51] : memref<16x128xbf16, #tpu.memory_space<vmem>>, vector<16x128xbf16>
        tpu.vector_store %arg9[%c0_50, %c0_51], %78 {strides = array<i32>} : memref<16x128xbf16, #tpu.memory_space<vmem>>, vector<16x128xbf16>,
      } else {
      }
    } else {
    }
    %c0 = arith.constant 0 : index
    %c0_1 = arith.constant 0 : index
    %5 = vector.load %arg2[%c0, %c0_1] : memref<16x16xbf16, #tpu.memory_space<vmem>>, vector<16x16xbf16>
    %c0_2 = arith.constant 0 : index
    %c0_3 = arith.constant 0 : index
    %6 = vector.load %arg9[%c0_2, %c0_3] : memref<16x128xbf16, #tpu.memory_space<vmem>>, vector<16x128xbf16>
    %cst = arith.constant dense<0.000000e+00> : vector<16x128xf32>
    %7 = tpu.matmul %5, %6, %cst {dimension_numbers = #tpu.dot_dimension_numbers<[1], [0], [0], [1], [0, 0, 1, 1], [], []>} : vector<16x16xbf16>, vector<16x128xbf16>, vector<16x128xf32> -> vector<16x128xf32>
    %c0_4 = arith.constant 0 : index
    %c0_5 = arith.constant 0 : index
    %c0_6 = arith.constant 0 : index
    %8 = vector.load %arg5[%c0_4, %c0_5, %c0_6] : memref<1x1x128xf32, #tpu.memory_space<vmem>>, vector<1x1x128xf32>
    %9 = vector.shape_cast %8 : vector<1x1x128xf32> to vector<1x128xf32>
    %10 = vector.broadcast %9 : vector<1x128xf32> to vector<16x128xf32>
    %11 = arith.addf %7, %10 : vector<16x128xf32>
    %cst_7 = arith.constant 0.000000e+00 : f32
    %12 = vector.broadcast %cst_7 : f32 to vector<16x128xf32>
    %13 = arith.maximumf %11, %12 : vector<16x128xf32>
    %c2_i32 = arith.constant 2 : i32
    %c0_i32_8 = arith.constant 0 : i32
    %14 = arith.cmpi eq, %c2_i32, %c0_i32_8 : i32
    %c1_i32 = arith.constant 1 : i32
    %15 = arith.select %14, %c1_i32, %c2_i32 : i32
    %16 = arith.remsi %arg0, %15 : i32
    %c0_i32_9 = arith.constant 0 : i32
    %17 = arith.cmpi ne, %16, %c0_i32_9 : i32
    %c0_i32_10 = arith.constant 0 : i32
    %18 = arith.cmpi slt, %16, %c0_i32_10 : i32
    %c0_i32_11 = arith.constant 0 : i32
    %19 = arith.cmpi slt, %15, %c0_i32_11 : i32
    %20 = arith.xori %18, %19 : i1
    %21 = arith.andi %20, %17 : i1
    %22 = arith.addi %16, %15 : i32
    %23 = arith.select %21, %22, %16 : i32
    %c0_i32_12 = arith.constant 0 : i32
    %24 = arith.cmpi eq, %23, %c0_i32_12 : i32
    %25 = arith.extui %24 : i1 to i32
    %c0_i32_13 = arith.constant 0 : i32
    %26 = arith.cmpi ne, %25, %c0_i32_13 : i32
    scf.if %26 {
      %41 = arith.index_cast %1 : i32 to index
      %c0_24 = arith.constant 0 : index
      %42 = vector.load %arg8[%41, %c0_24] : memref<16x128xf32, #tpu.memory_space<vmem>>, vector<16x128xf32>
      tpu.vector_store %arg8[%41, %c0_24], %13 {strides = array<i32>} : memref<16x128xf32, #tpu.memory_space<vmem>>, vector<16x128xf32>,
    } else {
    }
    %c2_i32_14 = arith.constant 2 : i32
    %c0_i32_15 = arith.constant 0 : i32
    %27 = arith.cmpi eq, %c2_i32_14, %c0_i32_15 : i32
    %c1_i32_16 = arith.constant 1 : i32
    %28 = arith.select %27, %c1_i32_16, %c2_i32_14 : i32
    %29 = arith.remsi %arg0, %28 : i32
    %c0_i32_17 = arith.constant 0 : i32
    %30 = arith.cmpi ne, %29, %c0_i32_17 : i32
    %c0_i32_18 = arith.constant 0 : i32
    %31 = arith.cmpi slt, %29, %c0_i32_18 : i32
    %c0_i32_19 = arith.constant 0 : i32
    %32 = arith.cmpi slt, %28, %c0_i32_19 : i32
    %33 = arith.xori %31, %32 : i1
    %34 = arith.andi %33, %30 : i1
    %35 = arith.addi %29, %28 : i32
    %36 = arith.select %34, %35, %29 : i32
    %c1_i32_20 = arith.constant 1 : i32
    %37 = arith.cmpi eq, %36, %c1_i32_20 : i32
    %38 = arith.extui %37 : i1 to i32
    %c0_i32_21 = arith.constant 0 : i32
    %39 = arith.cmpi ne, %38, %c0_i32_21 : i32
    scf.if %39 {
      %41 = arith.index_cast %1 : i32 to index
      %c0_24 = arith.constant 0 : index
      %42 = vector.load %arg7[%41, %c0_24] : memref<16x128xf32, #tpu.memory_space<vmem>>, vector<16x128xf32>
      tpu.vector_store %arg7[%41, %c0_24], %13 {strides = array<i32>} : memref<16x128xf32, #tpu.memory_space<vmem>>, vector<16x128xf32>,
    } else {
    }
    %c0_22 = arith.constant 0 : index
    %c0_23 = arith.constant 0 : index
    %40 = vector.load %arg6[%c0_22, %c0_23] : memref<16x128xf32, #tpu.memory_space<vmem>>, vector<16x128xf32>
    tpu.vector_store %arg6[%c0_22, %c0_23], %13 {strides = array<i32>} : memref<16x128xf32, #tpu.memory_space<vmem>>, vector<16x128xf32>,
    return
  }
  func.func @transform_0(%arg0: i32, %arg1: i32) -> (i32, i32) {
    %c0_i32 = arith.constant 0 : i32
    %c0_i32_0 = arith.constant 0 : i32
    return %arg1, %c0_i32 : i32, i32
  }
  func.func @transform_1(%arg0: i32, %arg1: i32) -> (i32, i32) {
    %c0_i32 = arith.constant 0 : i32
    %c0_i32_0 = arith.constant 0 : i32
    %c0_i32_1 = arith.constant 0 : i32
    return %c0_i32, %c0_i32_0 : i32, i32
  }
  func.func @transform_2(%arg0: i32, %arg1: i32) -> (i32, i32, i32) {
    %c0_i32 = arith.constant 0 : i32
    %c0_i32_0 = arith.constant 0 : i32
    %c0_i32_1 = arith.constant 0 : i32
    return %arg0, %c0_i32, %c0_i32_0 : i32, i32, i32
  }
  func.func @transform_3(%arg0: i32, %arg1: i32) -> (i32, i32, i32) {
    %c0_i32 = arith.constant 0 : i32
    %c0_i32_0 = arith.constant 0 : i32
    %c0_i32_1 = arith.constant 0 : i32
    return %arg0, %c0_i32, %c0_i32_0 : i32, i32, i32
  }
  func.func @transform_4(%arg0: i32, %arg1: i32) -> (i32, i32) {
    %c0_i32 = arith.constant 0 : i32
    %c0_i32_0 = arith.constant 0 : i32
    return %arg1, %c0_i32 : i32, i32
  }
}

</mosaic_0001>

<bundles_post_ra>
// kernel: tpu_custom_call.1
= control target key start
LH: loop header
LB: loop body
LE: loop exit
PB: predicated region body
PF: predicated region fallthrough
CT: control target
= control target key end

     0   :  { %9 = vsyncpa [#allocation6], 0  ;;  %s1232_s0 = inlined_call_operand.hbm [shape: bf16[16,16], index: 0, kind: input, shape index: {}]   ;;  %s1233_s1 = inlined_call_operand.hbm [shape: f32[16,128], index: 1, kind: input, shape index: {}]   ;;  %s1234_s2 = inlined_call_operand.hbm [shape: f32[2,128,128], index: 2, kind: input, shape index: {}]   ;;  %s1235_s3 = inlined_call_operand.vmem [shape: f32[2,1,128], index: 3, kind: input, shape index: {}]   ;;  %s1236_s4 = inlined_call_operand.hbm [shape: f32[16,128], index: 4, kind: output, shape index: {}]  }
   0x1   :  { %10 = vsyncpa [#allocation9], 0 }
   0x2   :  { %11 = vsyncpa [#allocation7], 0  ;;  %s1028_s15 = smov 0   ;;  %s1030_s16 = smov 0  }
   0x3   :  { %s1032_s17 = smov 0   ;;  %s1034_s18 = smov 0  }
   0x4   :  { %s1036_s19 = smov 0   ;;  %s1038_s20 = smov 0  }
   0x5 LB: > { %s1057_s21 = sadd.s32 4294967295, %s992_s20   ;;  %p96_p0 = scmp.ne.s32.totalorder %s976_s16, %s972_s15  ;;  %s992_s20 = sphi %s1038_s20, %s17_s20   ;;  %s988_s19 = sphi %s1036_s19, %s1244_s19   ;;  %s984_s18 = sphi %s1034_s18, %s1243_s18   ;;  %s980_s17 = sphi %s1032_s17, %s1242_s17   ;;  %s976_s16 = sphi %s1030_s16, %s1241_s16   ;;  %s972_s15 = sphi %s1028_s15, %s1240_s15  }
   0x6   : > { %p97_p1 = scmp.eq.s32.totalorder %s1057_s21, 0  ;;  %p623_p2 = scmp.ge.s32.totalorder %s992_s20, 1 }
   0x7   : > { %p159_p3 = scmp.lt.s32.totalorder %s992_s20, 3  ;;  %s173_s25 = sshll.u32 %s1232_s0, 4  ;;  %s174_s25 = int_to_ptr.hbm [resolvable:$true] %s173_s25 }
   0x8   : > { %p1065_p4 = por %p97_p1, %p96_p0  ;;  %s994_s27 = smov [#allocation5]  }
   0x9   : > { %p1072_p5 = pnand %p623_p2, %p159_p3  ;;  %s175_s28 = sshll.u32 %s994_s27, 4  ;;  %s176_s28 = int_to_ptr.vmem [resolvable:$true] %s175_s28 }
   0xa   : > { %s187_s5 = sshll.u32 %s1233_s1, 4  ;;  %s995_s6 = smov 64   ;;  %s188_s5 = int_to_ptr.hbm [resolvable:$true] %s187_s5 }
   0xb   : > { %p736_p6 = pneg %p1072_p5  ;;  %s996_s7 = smov 4  }
   0xc   : > { %s997_s8 = smov [#allocation8]   ;;  %s998_s10 = smov 128  }
   0xd   : > { %p737_p7 = pnand %p736_p6, %p97_p1  ;;  %s189_s9 = sshll.u32 %s997_s8, 4  ;;  %s190_s9 = int_to_ptr.vmem [resolvable:$true] %s189_s9 }
   0xe   : > { %s999_s11 = smov 8   ;;  %s29_s12 = sadd.s32 1, %s988_s19 }
   0xf   : > { %739 = dma.hbm_to_vmem [thread:$0]  (!%p737_p7), %s174_s25, 128, %s176_s28, [#allocation6], %s995_s6, %s995_s6, %s996_s7  }
  0x10   : > { %742 = dma.hbm_to_vmem [thread:$0]  (!%p737_p7), %s188_s5, 256, %s190_s9, [#allocation9], %s998_s10, %s998_s10, %s999_s11  }
  0x11   : > { %p31_p8 = scmp.ge.s32.totalorder %s29_s12, 2  ;;  %p90_p9 = scmp.ne.s32.totalorder %s980_s17, %s976_s16 }
  0x12   : > { %s83_s13 = sadd.s32 1, %s980_s17  ;;  %p91_p10 = scmp.eq.s32.totalorder %s992_s20, 0 }
  0x13   : > { %s1246_s12 = smov (%p31_p8, %s29_s12), 0  ;;  %p749_p12 = scmp.lt.s32.totalorder %s992_s20, 2 }
  0x14   : > { %p1093_p11 = por %p91_p10, %p90_p9  ;;  %s80_s15 = ssub.s32 %s988_s19, %s1246_s12 }
  0x15   : > { %s203_s23 = sand.u32 1, %s992_s20   ;;  %p81_p13 = scmp.eq.s32.totalorder %s80_s15, 0 }
  0x16   : > { %s205_s24 = sand.u32 1, %s980_s17   ;;  %s656_s27 = sshll.u32 %s988_s19, 7 }
  0x17   : > { %s627_s25 = sshll.u32 %s205_s24, 7  ;;  %s212_s5 = scalar_lea.hbm %s1234_s2, %s656_s27 }
  0x18   : > { %s1104_s28 = scalar_select %p81_p13, %s980_s17, %s83_s13  }
  0x19   : > { %s213_s6 = sshll.u32 %s212_s5, 4  ;;  %s207_s7 = scalar_lea.vmem [#allocation10], %s627_s25  ;;  %s214_s6 = int_to_ptr.hbm [resolvable:$true] %s213_s6 }
  0x1a   : > { %s215_s8 = sshll.u32 %s207_s7, 4  ;;  %p744_p0 = pnand %p749_p12, %p1093_p11  ;;  %s216_s8 = int_to_ptr.vmem [resolvable:$true] %s215_s8 }
  0x1b   : > { %s204_s9 = scalar_lea.sflag [#allocation6], %s203_s23  ;;  %233 = sbr.rel (%p1072_p5) target bundleno = 720 (0x2d0), region = 36 }
  0x1c   : > { %746 = dma.hbm_to_vmem [thread:$0]  (!%p744_p0), %s214_s6, 2048, %s216_s8, %s204_s9, %s998_s10, %s998_s10, %s999_s11  }
  0x20   : > { %955 = dma.done.wait (%p97_p1), [#allocation6], 128  }
  0x21   : > { %957 = vsyncadd (%p97_p1), [#allocation6], 4294967168 }
  0x22   : > { %959 = dma.done.wait (%p97_p1), [#allocation9], 256  }
  0x23   : > { %961 = vsyncadd (%p97_p1), [#allocation9], 4294967040  ;;  %s245_s13 = sand.u32 1, %s1057_s21   ;;  %s247_s10 = sand.u32 1, %s976_s16  }
  0x24   : > { %s633_s11 = sshll.u32 %s247_s10, 7  ;;  %s246_s26 = scalar_lea.sflag [#allocation6], %s245_s13 }
  0x25   : > { %s1128_s14 = scalar_lea.vmem [#allocation10], %s633_s11 }
  0x26   : > { %963 = dma.done.wait (%p1065_p4), %s246_s26, 2048  }
  0x27   : > { %965 = vsyncadd (%p1065_p4), %s246_s26, 4294965248  ;;  %p274_p2 = scmp.lt.s32.totalorder %s984_s18, 1  ;;  %p634_p1 = scmp.ne.s32.totalorder %s984_s18, 0 }
  0x29   : > { %s1136_s15 = scalar_select %p274_p2, %s984_s18, 1 }
  0x2a   : > { %287 = sbr.rel (%p634_p1) target bundleno = 208 (0xd0), region = 56 }
  0x2b   : > { %s276_s25 = scalar_lea.vmem %s1235_s3, %s1136_s15 }
  0x2f   : > { %v305_v0 = vld [vmem:[%s1128_s14 + $0x78] sm:$0xff]  ;;  %v304_v1 = vld [vmem:[%s1128_s14 + $0x70] sm:$0xff]  ;;  %v303_v2 = vld [vmem:[%s1128_s14 + $0x68] sm:$0xff] }
  0x30   : > { %306 = vmatpush.msra.mxu0 %v305_v0  ;;  %674 = vmatpush.msra.mxu1 %v305_v0  ;;  %v302_v3 = vld [vmem:[%s1128_s14 + $0x60] sm:$0xff]  ;;  %v301_v4 = vld [vmem:[%s1128_s14 + $0x58] sm:$0xff]  ;;  %v300_v5 = vld [vmem:[%s1128_s14 + $0x50] sm:$0xff] }
  0x31   : > { %v299_v6 = vld [vmem:[%s1128_s14 + $0x48] sm:$0xff]  ;;  %v298_v7 = vld [vmem:[%s1128_s14 + $0x40] sm:$0xff]  ;;  %v297_v8 = vld [vmem:[%s1128_s14 + $0x38] sm:$0xff] }
  0x32   : > { %307 = vmatpush.msra.mxu0 %v304_v1  ;;  %675 = vmatpush.msra.mxu1 %v304_v1  ;;  %v296_v9 = vld [vmem:[%s1128_s14 + $0x30] sm:$0xff]  ;;  %v295_v10 = vld [vmem:[%s1128_s14 + $0x28] sm:$0xff]  ;;  %v294_v11 = vld [vmem:[%s1128_s14 + $0x20] sm:$0xff] }
  0x33   : > { %v293_v12 = vld [vmem:[%s1128_s14 + $0x18] sm:$0xff]  ;;  %v292_v13 = vld [vmem:[%s1128_s14 + $0x10] sm:$0xff]  ;;  %v291_v14 = vld [vmem:[%s1128_s14 + $0x8] sm:$0xff] }
  0x34   : > { %308 = vmatpush.msra.mxu0 %v303_v2  ;;  %676 = vmatpush.msra.mxu1 %v303_v2  ;;  %v290_v15 = vld [vmem:[%s1128_s14] sm:$0xff]  ;;  %v288_v16 = vld [vmem:[#allocation8] sm:$0xff]  ;;  %v289_v17 = vld [vmem:[#allocation8 + $0x8] sm:$0xff] }
  0x36   : > { %309 = vmatpush.msra.mxu0 %v302_v3  ;;  %677 = vmatpush.msra.mxu1 %v302_v3 }
  0x38   : > { %310 = vmatpush.msra.mxu0 %v301_v4  ;;  %678 = vmatpush.msra.mxu1 %v301_v4 }
  0x3a   : > { %311 = vmatpush.msra.mxu0 %v300_v5  ;;  %679 = vmatpush.msra.mxu1 %v300_v5 }
  0x3c   : > { %312 = vmatpush.msra.mxu0 %v299_v6  ;;  %680 = vmatpush.msra.mxu1 %v299_v6 }
  0x3e   : > { %313 = vmatpush.msra.mxu0 %v298_v7  ;;  %681 = vmatpush.msra.mxu1 %v298_v7 }
  0x40   : > { %314 = vmatpush.msra.mxu0 %v297_v8  ;;  %682 = vmatpush.msra.mxu1 %v297_v8 }
  0x42   : > { %315 = vmatpush.msra.mxu0 %v296_v9  ;;  %683 = vmatpush.msra.mxu1 %v296_v9 }
  0x44   : > { %316 = vmatpush.msra.mxu0 %v295_v10  ;;  %684 = vmatpush.msra.mxu1 %v295_v10 }
  0x46   : > { %317 = vmatpush.msra.mxu0 %v294_v11  ;;  %685 = vmatpush.msra.mxu1 %v294_v11 }
  0x48   : > { %318 = vmatpush.msra.mxu0 %v293_v12  ;;  %686 = vmatpush.msra.mxu1 %v293_v12 }
  0x4a   : > { %319 = vmatpush.msra.mxu0 %v292_v13  ;;  %687 = vmatpush.msra.mxu1 %v292_v13 }
  0x4c   : > { %320 = vmatpush.msra.mxu0 %v291_v14  ;;  %688 = vmatpush.msra.mxu1 %v291_v14 }
  0x4e   : > { %321 = vmatpush.msra.mxu0 %v290_v15  ;;  %689 = vmatpush.msra.mxu1 %v290_v15 }
  0x4f   : > { %322 = vmatmul.f32.vlgmr.msra.gmra.mxu0 %v288_v16  ;;  %325 = vmatmul.f32.vlgmr.msra.gmra.mxu1 %v289_v17 }
  0xcc   : > { %v323_v18 = vpop.f32.mrf.mxu0  ;;  %v326_v19 = vpop.f32.mrf.mxu1 }
  0xcd   : > { %v662_v20 = vpack.c.bf16 %v326_v19, %v323_v18 }
  0xcf   : > { %663 = vst [vmem:[#allocation4] sm:$0xff] %v662_v20  }
  0xd0 PF: > { %p334_p3 = scmp.lt.s32.totalorder %s984_s18, 0  ;;  %s335_s22 = ssub.s32 0, %s984_s18 }
  0xd1   : > { %s635_s27 = smin.u32 %s984_s18, %s335_s22  ;;  %p333_p5 = scmp.gt.s32.totalorder %s984_s18, 0 }
  0xd2   : > { %s337_s29 = sand.u32 1, %s635_s27  }
  0xd3   : > { %s338_s30 = ssub.s32 0, %s337_s29 }
  0xd4   : > { %s1248_s30 = smov (!%p334_p3, %s338_s30), %s337_s29 }
  0xd5   : > { %p637_p4 = scmp.lt.s32.totalorder %s1248_s30, 0  ;;  %s344_s5 = sadd.s32 2, %s1248_s30 }
  0xd7   : > { %s1250_s5 = smov (!%p637_p4, %s344_s5), %s1248_s30 }
  0xd8   : > { %p346_p6 = scmp.eq.s32.totalorder %s1250_s5, 1 }
  0xda   : > { %p347_p7 = pnand %p346_p6, %p333_p5 }
  0xdc   : > { %350 = sbr.rel (%p347_p7) target bundleno = 386 (0x182), region = 60 }
  0xe1   : > { %v368_v21 = vld [vmem:[%s1128_s14 + $0x78] sm:$0xff]  ;;  %v367_v22 = vld [vmem:[%s1128_s14 + $0x70] sm:$0xff]  ;;  %v366_v23 = vld [vmem:[%s1128_s14 + $0x68] sm:$0xff] }
  0xe2   : > { %369 = vmatpush.msra.mxu0 %v368_v21  ;;  %690 = vmatpush.msra.mxu1 %v368_v21  ;;  %v365_v24 = vld [vmem:[%s1128_s14 + $0x60] sm:$0xff]  ;;  %v364_v25 = vld [vmem:[%s1128_s14 + $0x58] sm:$0xff]  ;;  %v363_v26 = vld [vmem:[%s1128_s14 + $0x50] sm:$0xff] }
  0xe3   : > { %v362_v27 = vld [vmem:[%s1128_s14 + $0x48] sm:$0xff]  ;;  %v361_v28 = vld [vmem:[%s1128_s14 + $0x40] sm:$0xff]  ;;  %v360_v29 = vld [vmem:[%s1128_s14 + $0x38] sm:$0xff] }
  0xe4   : > { %370 = vmatpush.msra.mxu0 %v367_v22  ;;  %691 = vmatpush.msra.mxu1 %v367_v22  ;;  %v359_v30 = vld [vmem:[%s1128_s14 + $0x30] sm:$0xff]  ;;  %v358_v31 = vld [vmem:[%s1128_s14 + $0x28] sm:$0xff]  ;;  %v357_v32 = vld [vmem:[%s1128_s14 + $0x20] sm:$0xff] }
  0xe5   : > { %v356_v33 = vld [vmem:[%s1128_s14 + $0x18] sm:$0xff]  ;;  %v355_v34 = vld [vmem:[%s1128_s14 + $0x10] sm:$0xff]  ;;  %v354_v35 = vld [vmem:[%s1128_s14 + $0x8] sm:$0xff] }
  0xe6   : > { %371 = vmatpush.msra.mxu0 %v366_v23  ;;  %692 = vmatpush.msra.mxu1 %v366_v23  ;;  %v353_v36 = vld [vmem:[%s1128_s14] sm:$0xff]  ;;  %v351_v37 = vld [vmem:[#allocation3 + $0x8] sm:$0xff]  ;;  %v352_v38 = vld [vmem:[#allocation3] sm:$0xff] }
  0xe8   : > { %372 = vmatpush.msra.mxu0 %v365_v24  ;;  %693 = vmatpush.msra.mxu1 %v365_v24 }
  0xea   : > { %373 = vmatpush.msra.mxu0 %v364_v25  ;;  %694 = vmatpush.msra.mxu1 %v364_v25 }
  0xec   : > { %374 = vmatpush.msra.mxu0 %v363_v26  ;;  %695 = vmatpush.msra.mxu1 %v363_v26 }
  0xee   : > { %375 = vmatpush.msra.mxu0 %v362_v27  ;;  %696 = vmatpush.msra.mxu1 %v362_v27 }
  0xf0   : > { %376 = vmatpush.msra.mxu0 %v361_v28  ;;  %697 = vmatpush.msra.mxu1 %v361_v28 }
  0xf2   : > { %377 = vmatpush.msra.mxu0 %v360_v29  ;;  %698 = vmatpush.msra.mxu1 %v360_v29 }
  0xf4   : > { %378 = vmatpush.msra.mxu0 %v359_v30  ;;  %699 = vmatpush.msra.mxu1 %v359_v30 }
  0xf6   : > { %379 = vmatpush.msra.mxu0 %v358_v31  ;;  %700 = vmatpush.msra.mxu1 %v358_v31 }
  0xf8   : > { %380 = vmatpush.msra.mxu0 %v357_v32  ;;  %701 = vmatpush.msra.mxu1 %v357_v32 }
  0xfa   : > { %381 = vmatpush.msra.mxu0 %v356_v33  ;;  %702 = vmatpush.msra.mxu1 %v356_v33 }
  0xfc   : > { %382 = vmatpush.msra.mxu0 %v355_v34  ;;  %703 = vmatpush.msra.mxu1 %v355_v34 }
  0xfe   : > { %383 = vmatpush.msra.mxu0 %v354_v35  ;;  %704 = vmatpush.msra.mxu1 %v354_v35 }
 0x100   : > { %384 = vmatpush.msra.mxu0 %v353_v36  ;;  %705 = vmatpush.msra.mxu1 %v353_v36 }
 0x101   : > { %385 = vmatmul.f32.vlgmr.msra.gmra.mxu0 %v351_v37  ;;  %388 = vmatmul.f32.vlgmr.msra.gmra.mxu1 %v352_v38 }
 0x17e   : > { %v386_v39 = vpop.f32.mrf.mxu0  ;;  %v389_v40 = vpop.f32.mrf.mxu1 }
 0x17f   : > { %v667_v41 = vpack.c.bf16 %v389_v40, %v386_v39 }
 0x181   : > { %668 = vst [vmem:[#allocation4] sm:$0xff] %v667_v41  }
 0x182 PF: > { %p396_p8 = scmp.eq.s32.totalorder %s1250_s5, 0 }
 0x184   : > { %p397_p9 = pnand %p396_p8, %p333_p5 }
 0x186   : > { %400 = sbr.rel (%p397_p9) target bundleno = 556 (0x22c), region = 64 }
 0x18b   : > { %v418_v42 = vld [vmem:[%s1128_s14 + $0x78] sm:$0xff]  ;;  %v417_v43 = vld [vmem:[%s1128_s14 + $0x70] sm:$0xff]  ;;  %v416_v44 = vld [vmem:[%s1128_s14 + $0x68] sm:$0xff] }
 0x18c   : > { %419 = vmatpush.msra.mxu0 %v418_v42  ;;  %706 = vmatpush.msra.mxu1 %v418_v42  ;;  %v415_v45 = vld [vmem:[%s1128_s14 + $0x60] sm:$0xff]  ;;  %v414_v46 = vld [vmem:[%s1128_s14 + $0x58] sm:$0xff]  ;;  %v413_v47 = vld [vmem:[%s1128_s14 + $0x50] sm:$0xff] }
 0x18d   : > { %v412_v48 = vld [vmem:[%s1128_s14 + $0x48] sm:$0xff]  ;;  %v411_v49 = vld [vmem:[%s1128_s14 + $0x40] sm:$0xff]  ;;  %v410_v50 = vld [vmem:[%s1128_s14 + $0x38] sm:$0xff] }
 0x18e   : > { %420 = vmatpush.msra.mxu0 %v417_v43  ;;  %707 = vmatpush.msra.mxu1 %v417_v43  ;;  %v409_v51 = vld [vmem:[%s1128_s14 + $0x30] sm:$0xff]  ;;  %v408_v52 = vld [vmem:[%s1128_s14 + $0x28] sm:$0xff]  ;;  %v407_v53 = vld [vmem:[%s1128_s14 + $0x20] sm:$0xff] }
 0x18f   : > { %v406_v54 = vld [vmem:[%s1128_s14 + $0x18] sm:$0xff]  ;;  %v405_v55 = vld [vmem:[%s1128_s14 + $0x10] sm:$0xff]  ;;  %v404_v56 = vld [vmem:[%s1128_s14 + $0x8] sm:$0xff] }
 0x190   : > { %421 = vmatpush.msra.mxu0 %v416_v44  ;;  %708 = vmatpush.msra.mxu1 %v416_v44  ;;  %v403_v57 = vld [vmem:[%s1128_s14] sm:$0xff]  ;;  %v402_v59 = vld [vmem:[#allocation2 + $0x8] sm:$0xff] }
 0x191   : > { %v401_v58 = vld [vmem:[#allocation2] sm:$0xff] }
 0x192   : > { %422 = vmatpush.msra.mxu0 %v415_v45  ;;  %709 = vmatpush.msra.mxu1 %v415_v45 }
 0x194   : > { %423 = vmatpush.msra.mxu0 %v414_v46  ;;  %710 = vmatpush.msra.mxu1 %v414_v46 }
 0x196   : > { %424 = vmatpush.msra.mxu0 %v413_v47  ;;  %711 = vmatpush.msra.mxu1 %v413_v47 }
 0x198   : > { %425 = vmatpush.msra.mxu0 %v412_v48  ;;  %712 = vmatpush.msra.mxu1 %v412_v48 }
 0x19a   : > { %426 = vmatpush.msra.mxu0 %v411_v49  ;;  %713 = vmatpush.msra.mxu1 %v411_v49 }
 0x19c   : > { %427 = vmatpush.msra.mxu0 %v410_v50  ;;  %714 = vmatpush.msra.mxu1 %v410_v50 }
 0x19e   : > { %428 = vmatpush.msra.mxu0 %v409_v51  ;;  %715 = vmatpush.msra.mxu1 %v409_v51 }
 0x1a0   : > { %429 = vmatpush.msra.mxu0 %v408_v52  ;;  %716 = vmatpush.msra.mxu1 %v408_v52 }
 0x1a2   : > { %430 = vmatpush.msra.mxu0 %v407_v53  ;;  %717 = vmatpush.msra.mxu1 %v407_v53 }
 0x1a4   : > { %431 = vmatpush.msra.mxu0 %v406_v54  ;;  %718 = vmatpush.msra.mxu1 %v406_v54 }
 0x1a6   : > { %432 = vmatpush.msra.mxu0 %v405_v55  ;;  %719 = vmatpush.msra.mxu1 %v405_v55 }
 0x1a8   : > { %433 = vmatpush.msra.mxu0 %v404_v56  ;;  %720 = vmatpush.msra.mxu1 %v404_v56 }
 0x1aa   : > { %434 = vmatpush.msra.mxu0 %v403_v57  ;;  %721 = vmatpush.msra.mxu1 %v403_v57 }
 0x1ab   : > { %435 = vmatmul.f32.vlgmr.msra.gmra.mxu0 %v401_v58  ;;  %438 = vmatmul.f32.vlgmr.msra.gmra.mxu1 %v402_v59 }
 0x228   : > { %v436_v60 = vpop.f32.mrf.mxu0  ;;  %v439_v61 = vpop.f32.mrf.mxu1 }
 0x229   : > { %v672_v62 = vpack.c.bf16 %v439_v61, %v436_v60 }
 0x22b   : > { %673 = vst [vmem:[#allocation4] sm:$0xff] %v672_v62  }
 0x22c PF: > { %v657_v0 = vld [vmem:[#allocation5] sm:$0xff]  ;;  %vm465_vm0 = vcmask 130048   ;;  %v811_v1 = vld [vmem:[%s276_s25] ss:$0 sm:$0xff]  ;;  %p650_p10 = scmp.ne.s32.totalorder %s1250_s5, 0 }
 0x232   : > { %v658_v63 = vld [vmem:[#allocation4] sm:$0xff] }
 0x233   : > { %476 = vmatpush.bf16.msra.mxu0 %v658_v63 }
 0x236   : > { %646 = vmatmul.msk.bf16.vlgmr.msra.gmra.mxu0 %vm465_vm0, %v657_v0 }
 0x2b3   : > { %v478_v2 = vpop.f32.mrf.mxu0 }
 0x2b4   : > { %v479_v3 = vadd.f32 %v811_v1, %v478_v2 }
 0x2b6   : > { %v483_v4 = vmax.f32 %v479_v3, 0.0 }
 0x2ba   : > { %500 = sbr.rel (%p650_p10) target bundleno = 705 (0x2c1), region = 68 }
 0x2bb   : > { %v480_v5 = vpop.f32.mrf.mxu0 }
 0x2bc   : > { %v481_v6 = vadd.f32 %v811_v1, %v480_v5 }
 0x2be   : > { %v484_v7 = vmax.f32 %v481_v6, 0.0 }
 0x2bf   : > { %502 = vst [vmem:[#allocation3 + $0x8] sm:$0xff] %v483_v4 }
 0x2c0   : > { %503 = vst [vmem:[#allocation3] sm:$0xff] %v484_v7 }
 0x2c1 PF: > { %p651_p11 = scmp.ne.s32.totalorder %s1250_s5, 1 }
 0x2c3   : > { %507 = sbr.rel (%p651_p11) target bundleno = 714 (0x2ca), region = 72 }
 0x2c8   : > { %509 = vst [vmem:[#allocation2] sm:$0xff] %v483_v4 }
 0x2c9   : > { %510 = vst [vmem:[#allocation2 + $0x8] sm:$0xff] %v484_v7 }
 0x2ca PF: > { %511 = vst [vmem:[#allocation11] sm:$0xff] %v483_v4  ;;  %p752_p12 = scmp.eq.s32.totalorder %s1057_s21, 1  ;;  %s523_s9 = sshll.u32 %s1236_s4, 4  ;;  %s524_s9 = int_to_ptr.hbm [resolvable:$true] %s523_s9 }
 0x2cb   : > { %512 = vst [vmem:[#allocation11 + $0x8] sm:$0xff] %v484_v7  ;;  %s1000_s13 = smov [#allocation11]   ;;  %s1001_s11 = smov 128  }
 0x2cc   : > { %s521_s10 = sshll.u32 %s1000_s13, 4  ;;  %s1002_s26 = smov 8   ;;  %s522_s10 = int_to_ptr.vmem [resolvable:$true] %s521_s10 }
 0x2cd   : > { %733 = dma.vmem_to_hbm [thread:$0]  (%p752_p12), %s522_s10, 256, %s524_s9, [#allocation7], %s1001_s11, %s1001_s11, %s1002_s26  }
 0x2ce   : > { %967 = dma.done.wait (%p752_p12), [#allocation7], 256  }
 0x2cf   : > { %969 = vsyncadd (%p752_p12), [#allocation7], 4294967040 }
 0x2d0 PF: > { %s17_s20 = sadd.s32 1, %s992_s20   ;;  %s1240_s15 = smov %s976_s16 }
 0x2d1   : > { %p14_p13 = scmp.ge.s32.totalorder %s17_s20, 4   ;;  %s1241_s16 = smov %s980_s17 }
 0x2d2   : > { %s1242_s17 = smov %s1104_s28  ;;  %s1243_s18 = smov %s988_s19 }
 0x2d3   : > { %s1244_s19 = smov %s1246_s12  ;;  %16 = sbr.rel (!%p14_p13) target bundleno = 5 (0x5), region = 111 }
 0x2d8   :  { %540 = vsyncpa [#allocation6], 1 }
 0x2d9   :  { %542 = vsyncpa [#allocation6 + $0x1], 1 }
 0x2da   :  { %543 = vsyncpa [#allocation9], 1 }
 0x2db   :  { %544 = vsyncpa [#allocation7], 1 }
 0x2dc   :  { %546 = vsyncpa [#allocation7 + $0x1], 1 }

</bundles_post_ra>
